<compile_context>
chip_gen: v7x
topology: tpu7x:2x2x1
jax: 0.10.0
libtpu: 0.0.40
codegen_flags: <defaults>
</compile_context>

<pallas_src>
import functools

import jax
import jax.numpy as jnp
from jax.experimental import pallas as pl
from jax.experimental.pallas import tpu as pltpu

IN_FEATURES = 103
OUT_FEATURES = 200


def linear_relu_kernel(x_ref, w_ref, b_ref, o_ref):
    # x_ref: (tb, 103), w_ref: (103, 200), b_ref: (1, 200), o_ref: (tb, 200)
    y = jnp.dot(x_ref[...], w_ref[...], preferred_element_type=jnp.float32)
    o_ref[...] = jnp.maximum(y + b_ref[...], 0.0).astype(o_ref.dtype)


@functools.partial(jax.jit, static_argnames=("tile_b",))
def new_front_model_forward(x, w_t, b, *, tile_b=2048):
    """x: (B, 103) f32, w_t: (103, 200) f32, b: (200,) f32 -> (B, 200) f32."""
    B = x.shape[0]
    b2d = b.reshape(1, OUT_FEATURES)  # 800 bytes; negligible

    if B <= tile_b:
        tb = B                              # single block == full dim (legal)
    else:
        tb = max(8, (tile_b // 8) * 8)      # multi-tile: keep sublane-aligned
    n_tiles = pl.cdiv(B, tb)                # ragged last block handled by Pallas

    flops = 2 * B * IN_FEATURES * OUT_FEATURES
    bytes_accessed = 4 * (B * IN_FEATURES + IN_FEATURES * OUT_FEATURES
                          + OUT_FEATURES + B * OUT_FEATURES)

    return pl.pallas_call(
        linear_relu_kernel,
        out_shape=jax.ShapeDtypeStruct((B, OUT_FEATURES), jnp.float32),
        grid=(n_tiles,),
        in_specs=[
            pl.BlockSpec((tb, IN_FEATURES), lambda i: (i, 0)),            # x streams
            pl.BlockSpec((IN_FEATURES, OUT_FEATURES), lambda i: (0, 0)),  # W resident
            pl.BlockSpec((1, OUT_FEATURES), lambda i: (0, 0)),            # bias resident
        ],
        out_specs=pl.BlockSpec((tb, OUT_FEATURES), lambda i: (i, 0)),
        compiler_params=pltpu.CompilerParams(
            dimension_semantics=("parallel",),          # v7x: shard batch over 2 TCs
        ),
        cost_estimate=pl.CostEstimate(
            flops=flops, transcendentals=0, bytes_accessed=bytes_accessed),
    )(x, w_t, b2d)


def init_params(key):
    """Deterministic init mimicking nn.Linear default (U(-k, k), k=1/sqrt(fan_in))."""
    kw, kb = jax.random.split(key)
    bound = 1.0 / jnp.sqrt(jnp.float32(IN_FEATURES))
    # PyTorch weight is (out, in); store transposed (in, out) for x @ W.
    w_t = jax.random.uniform(
        kw, (IN_FEATURES, OUT_FEATURES), jnp.float32, -bound, bound)
    b = jax.random.uniform(kb, (OUT_FEATURES,), jnp.float32, -bound, bound)
    return w_t, b


if __name__ == "__main__":
    key = jax.random.PRNGKey(0)
    kx, kp = jax.random.split(key)

    w_t, b = init_params(kp)

    # Small primary test (single tile path).
    batch = 8
    x = jax.random.normal(kx, (batch, IN_FEATURES), jnp.float32)
    out = jax.block_until_ready(new_front_model_forward(x, w_t, b))
    ref = jnp.maximum(x @ w_t + b[None, :], 0.0)
    assert out.shape == (batch, OUT_FEATURES)
    assert jnp.allclose(out, ref, atol=1e-5, rtol=1e-5)

    # Larger, non-multiple-of-8 batch: still a single full-dim tile.
    batch2 = 1030
    x2 = jax.random.normal(kx, (batch2, IN_FEATURES), jnp.float32)
    out2 = jax.block_until_ready(new_front_model_forward(x2, w_t, b))
    ref2 = jnp.maximum(x2 @ w_t + b[None, :], 0.0)
    assert out2.shape == (batch2, OUT_FEATURES)
    assert jnp.allclose(out2, ref2, atol=1e-4, rtol=1e-4)

    # Force the multi-tile + ragged-last-block path (3 tiles: 512/512/6 rows).
    out3 = jax.block_until_ready(new_front_model_forward(x2, w_t, b, tile_b=512))
    assert out3.shape == (batch2, OUT_FEATURES)
    assert jnp.allclose(out3, ref2, atol=1e-4, rtol=1e-4)

    print("KERNEL_OK")
</pallas_src>

<mosaic_0001>
module attributes {stable_mosaic.version = 11 : i64} {
  func.func @linear_relu_kernel(%arg0: i32, %arg1: memref<8x103xf32, #tpu.memory_space<vmem>>, %arg2: memref<103x200xf32, #tpu.memory_space<vmem>>, %arg3: memref<1x200xf32, #tpu.memory_space<vmem>>, %arg4: memref<8x200xf32, #tpu.memory_space<vmem>>) attributes {dimension_semantics = [#tpu.dimension_semantics<parallel>], iteration_bounds = array<i64: 1>, scalar_prefetch = 0 : i64, scratch_operands = 0 : i64, tpu.core_type = #tpu.core_type<tc>, window_params = [{transform_indices = @transform_0, window_bounds = array<i64: 8, 103>}, {pipeline_mode = #tpu.pipeline_mode<synchronous>, transform_indices = @transform_1, window_bounds = array<i64: 103, 200>}, {pipeline_mode = #tpu.pipeline_mode<synchronous>, transform_indices = @transform_2, window_bounds = array<i64: 1, 200>}, {transform_indices = @transform_3, window_bounds = array<i64: 8, 200>}]} {
    %c0 = arith.constant 0 : index
    %c0_0 = arith.constant 0 : index
    %0 = vector.load %arg1[%c0, %c0_0] : memref<8x103xf32, #tpu.memory_space<vmem>>, vector<8x103xf32>
    %c0_1 = arith.constant 0 : index
    %c0_2 = arith.constant 0 : index
    %1 = vector.load %arg2[%c0_1, %c0_2] : memref<103x200xf32, #tpu.memory_space<vmem>>, vector<103x200xf32>
    %cst = arith.constant dense<0.000000e+00> : vector<8x200xf32>
    %2 = tpu.matmul %0, %1, %cst {dimension_numbers = #tpu.dot_dimension_numbers<[1], [0], [0], [1], [0, 0, 1, 1], [], []>} : vector<8x103xf32>, vector<103x200xf32>, vector<8x200xf32> -> vector<8x200xf32>
    %c0_3 = arith.constant 0 : index
    %c0_4 = arith.constant 0 : index
    %3 = vector.load %arg3[%c0_3, %c0_4] : memref<1x200xf32, #tpu.memory_space<vmem>>, vector<1x200xf32>
    %4 = vector.broadcast %3 : vector<1x200xf32> to vector<8x200xf32>
    %5 = arith.addf %2, %4 : vector<8x200xf32>
    %cst_5 = arith.constant 0.000000e+00 : f32
    %6 = vector.broadcast %cst_5 : f32 to vector<8x200xf32>
    %7 = arith.maximumf %5, %6 : vector<8x200xf32>
    %c0_6 = arith.constant 0 : index
    %c0_7 = arith.constant 0 : index
    %8 = vector.load %arg4[%c0_6, %c0_7] : memref<8x200xf32, #tpu.memory_space<vmem>>, vector<8x200xf32>
    tpu.vector_store %arg4[%c0_6, %c0_7], %7 {strides = array<i32>} : memref<8x200xf32, #tpu.memory_space<vmem>>, vector<8x200xf32>,
    return
  }
  func.func @transform_0(%arg0: i32) -> (i32, i32) {
    %c0_i32 = arith.constant 0 : i32
    %c0_i32_0 = arith.constant 0 : i32
    return %arg0, %c0_i32 : i32, i32
  }
  func.func @transform_1(%arg0: i32) -> (i32, i32) {
    %c0_i32 = arith.constant 0 : i32
    %c0_i32_0 = arith.constant 0 : i32
    %c0_i32_1 = arith.constant 0 : i32
    return %c0_i32, %c0_i32_0 : i32, i32
  }
  func.func @transform_2(%arg0: i32) -> (i32, i32) {
    %c0_i32 = arith.constant 0 : i32
    %c0_i32_0 = arith.constant 0 : i32
    %c0_i32_1 = arith.constant 0 : i32
    return %c0_i32, %c0_i32_0 : i32, i32
  }
  func.func @transform_3(%arg0: i32) -> (i32, i32) {
    %c0_i32 = arith.constant 0 : i32
    %c0_i32_0 = arith.constant 0 : i32
    return %arg0, %c0_i32 : i32, i32
  }
}

</mosaic_0001>

<bundles_post_ra>
// kernel: new_front_model_forward.1
= control target key start
LH: loop header
LB: loop body
LE: loop exit
PB: predicated region body
PF: predicated region fallthrough
CT: control target
= control target key end

     0   :  { %v208_v7 = vmov 0.0   ;;  %s326_s0 = inlined_call_operand.vmem [shape: f32[8,103], index: 0, kind: input, shape index: {}]   ;;  %s327_s1 = inlined_call_operand.vmem [shape: f32[103,200], index: 1, kind: input, shape index: {}]   ;;  %s328_s2 = inlined_call_operand.vmem [shape: f32[1,200], index: 2, kind: input, shape index: {}]   ;;  %s329_s3 = inlined_call_operand.hbm [shape: f32[8,200], index: 3, kind: output, shape index: {}]  }
   0x1   :  { %v17_v0 = vld [vmem:[%s327_s1 + $0x8] sm:$0xff]  ;;  %v19_v1 = vld [vmem:[%s327_s1 + $0x18] sm:$0xff]  ;;  %v16_v2 = vld [vmem:[%s327_s1] sm:$0xff]  ;;  %129 = vmatprep.mubr.f32.mxu0 %v208_v7 }
   0x2   :  { %v158_v3 = vpack.c.bf16 %v19_v1, %v17_v0  ;;  %v18_v4 = vld [vmem:[%s327_s1 + $0x10] sm:$0xff]  ;;  %v21_v5 = vld [vmem:[%s327_s1 + $0x28] sm:$0xff]  ;;  %v23_v6 = vld [vmem:[%s327_s1 + $0x38] sm:$0xff] }
   0x3   :  { %v160_v8 = vpack.c.bf16 %v18_v4, %v16_v2  ;;  %v162_v9 = vpack.c.bf16 %v23_v6, %v21_v5  ;;  %v20_v10 = vld [vmem:[%s327_s1 + $0x20] sm:$0xff]  ;;  %v22_v11 = vld [vmem:[%s327_s1 + $0x30] sm:$0xff]  ;;  %v25_v12 = vld [vmem:[%s327_s1 + $0x48] sm:$0xff] }
   0x4   :  { %159 = vmatprep.subr.bf16.mxu0 %v158_v3  ;;  %v27_v13 = vld [vmem:[%s327_s1 + $0x58] sm:$0xff]  ;;  %v164_v14 = vpack.c.bf16 %v22_v11, %v20_v10  ;;  %v24_v16 = vld [vmem:[%s327_s1 + $0x40] sm:$0xff]  ;;  %v26_v17 = vld [vmem:[%s327_s1 + $0x50] sm:$0xff] }
   0x5   :  { %161 = vmatpush1.bf16.msra.mxu0 %v160_v8  ;;  %v166_v15 = vpack.c.bf16 %v27_v13, %v25_v12  ;;  %v29_v18 = vld [vmem:[%s327_s1 + $0x68] sm:$0xff]  ;;  %v31_v19 = vld [vmem:[%s327_s1 + $0x78] sm:$0xff]  ;;  %v168_v20 = vpack.c.bf16 %v26_v17, %v24_v16  ;;  %v28_v22 = vld [vmem:[%s327_s1 + $0x60] sm:$0xff] }
   0x6   :  { %163 = vmatprep.subr.bf16.mxu0 %v162_v9  ;;  %v170_v21 = vpack.c.bf16 %v31_v19, %v29_v18  ;;  %v30_v23 = vld [vmem:[%s327_s1 + $0x70] sm:$0xff] }
   0x9   :  { %165 = vmatpush1.bf16.msra.mxu0 %v164_v14 }
   0xa   :  { %167 = vmatprep.subr.bf16.mxu0 %v166_v15 }
   0xb   :  { %8 = vsyncpa [#allocation3], 0  ;;  %v33_v24 = vld [vmem:[%s327_s1 + $0x88] sm:$0xff]  ;;  %v35_v25 = vld [vmem:[%s327_s1 + $0x98] sm:$0xff]  ;;  %v172_v26 = vpack.c.bf16 %v30_v23, %v28_v22  ;;  %vm58_vm0 = vcmask 1046528   ;;  %vm54_vm1 = vcmask 842752   ;;  %v44_v40 = vlaneseq }
   0xc   :  { %v174_v27 = vpack.c.bf16 %v35_v25, %v33_v24  ;;  %v32_v28 = vld [vmem:[%s327_s1 + $0x80] sm:$0xff]  ;;  %v34_v29 = vld [vmem:[%s327_s1 + $0x90] sm:$0xff]  ;;  %v37_v30 = vld [vmem:[%s327_s1 + $0xa8] sm:$0xff]  ;;  %vm139_vm2 = vcmask 588800  }
   0xd   :  { %169 = vmatpush1.bf16.msra.mxu0 %v168_v20  ;;  %v39_v31 = vld [vmem:[%s327_s1 + $0xb8] sm:$0xff]  ;;  %v176_v32 = vpack.c.bf16 %v34_v29, %v32_v28  ;;  %v36_v34 = vld [vmem:[%s327_s1 + $0xa0] sm:$0xff]  ;;  %v38_v35 = vld [vmem:[%s327_s1 + $0xb0] sm:$0xff]  ;;  %v45_v41 = vshrl.u32 %v44_v40, 7 }
   0xe   :  { %171 = vmatprep.subr.bf16.mxu0 %v170_v21  ;;  %v178_v33 = vpack.c.bf16 %v39_v31, %v37_v30  ;;  %v180_v36 = vpack.c.bf16 %v38_v35, %v36_v34  ;;  %v41_v37 = vld [vmem:[%s327_s1 + $0xc8] sm:$0x7f]  ;;  %v40_v38 = vld [vmem:[%s327_s1 + $0xc0] sm:$0x7f]  ;;  %s209_s1 = smov [#allocation2]  }
   0xf   :  { %v15_v39 = vld [vmem:[%s326_s0] sm:$0xff]  ;;  %v46_v42 = vsub.s32 0, %v45_v41  ;;  %v50_v44 = vsub.s32 1, %v45_v41  ;;  %s147_s14 = sshll.u32 %s209_s1, 4  ;;  %s148_s14 = int_to_ptr.vmem [resolvable:$true] %s147_s14 }
  0x10   :  { %v42_v43 = vld [vmem:[%s328_s2] sm:$0x3]  ;;  %s184_s0 = scalar_lea.vmem %s148_s14, 256  ;;  %p189_p1 = scmp.lt.s32.totalorder %s148_s14, %s148_s14 }
  0x11   :  { %173 = vmatpush1.bf16.msra.mxu0 %v172_v26  ;;  %v47_v45 = vrot.slane %v42_v43, %v46_v42  ;;  %v51_v46 = vrot.slane %v42_v43, %v50_v44  ;;  %p185_p0 = scmp.ne.s32.totalorder %s148_s14, %s184_s0  ;;  %p190_p2 = scmp.lt.s32.totalorder %s184_s0, %s184_s0 }
  0x12   :  { %175 = vmatprep.subr.bf16.mxu0 %v174_v27 }
  0x13   :  { %p191_p3 = por %p190_p2, %p189_p1 }
  0x15   :  { %177 = vmatpush1.bf16.msra.mxu0 %v176_v32  ;;  %p192_p4 = pnand %p191_p3, %p185_p0 }
  0x16   :  { %179 = vmatprep.subr.bf16.mxu0 %v178_v33 }
  0x19   :  { %181 = vmatpush1.bf16.msra.mxu0 %v180_v36 }
  0x1a   :  { %155 = vmatprep.subr.msk.mxu0 %vm58_vm0, %v41_v37 }
  0x1d   :  { %156 = vmatpush1.msk.msra.mxu0 %vm58_vm0, %v40_v38 }
  0x1e   :  { %157 = vmatmul.mubr.msk.f32.vlgmr.msra.gmra.mrb[0].mxu0 %vm54_vm1, %v15_v39 }
  0xf1   :  { %v131_v47 = vpop.f32.mrb[0].mxu0 }
  0xf2   :  { %v132_v48 = vadd.f32 %v131_v47, %v47_v45  ;;  %v133_v49 = vpop.f32.mrb[1].mxu0 }
  0xf3   :  { %v134_v50 = vadd.f32 %v133_v49, %v51_v46 }
  0xf4   :  { %v136_v51 = vmax.f32 %v132_v48, 0.0 }
  0xf5   :  { %v137_v52 = vmax.f32 %v134_v50, 0.0 }
  0xf6   :  { %138 = vst [vmem:[#allocation2] sm:$0xff] %v136_v51 }
  0xf7   :  { %140 = vst.msk [vmem:[#allocation2 + $0x8] sm:$0xff] %vm139_vm2, %v137_v52 }
  0xf8   :  { %195 = shalt.err (!%p192_p4)
}
  0xf9   :  { %s196_s16 = scalar_lea.hbm %s329_s3, 256 }
  0xfa   :  { %p197_p5 = scmp.ne.s32.totalorder %s329_s3, %s196_s16  ;;  %p200_p6 = scmp.lt.u32.totalorder %s196_s16, %s329_s3 }
  0xfc   :  { %p202_p7 = pnand %p200_p6, %p197_p5 }
  0xfe   :  { %205 = shalt.err (!%p202_p7)
}
  0xff   :  { %150 = dma.vmem_to_hbm [thread:$0]  %s148_s14, 256, %s329_s3, [#allocation3]  }
 0x100   :  { %206 = dma.done.wait [#allocation3], 256  }
 0x101   :  { %207 = vsyncadd [#allocation3], 4294967040 }
 0x102   :  { %154 = vsyncpa [#allocation3], 1 }

</bundles_post_ra>
